<compile_context>
chip_gen: v5e
topology: v5e:2x2
jax: 0.10.0
libtpu: 0.0.40
codegen_flags: <defaults>
</compile_context>

<pallas_src>
import functools

import jax
import jax.numpy as jnp
from jax.experimental import pallas as pl
from jax.experimental.pallas import tpu as pltpu


def _dropout_randn_sum_kernel(x_ref, u_ref, noise_ref, out_ref, *, p):
    """x_ref, u_ref, noise_ref: (1, N) f32 VMEM.  out_ref: (1,) f32 SMEM."""
    x = x_ref[...]
    inv_keep = jnp.float32(1.0 / (1.0 - p))
    # dropout(x, p): keep with prob (1-p), scale kept values by 1/(1-p).
    keep = u_ref[...] >= jnp.float32(p)
    v1 = jnp.where(keep, x * inv_keep, jnp.float32(0.0))
    # (v1 * v2).sum() -> scalar, stored straight to SMEM.
    out_ref[0] = jnp.sum(v1 * noise_ref[...])


def dropout_randn_sum(x, seed, p=0.3):
    """JAX/Pallas equivalent of Model.forward (returns a scalar f32)."""
    n = x.size
    x_flat = x.reshape(1, n).astype(jnp.float32)

    key = jax.random.PRNGKey(seed)
    k_drop, k_noise = jax.random.split(key)
    u_drop = jax.random.uniform(k_drop, (1, n), dtype=jnp.float32)   # dropout mask draws
    noise = jax.random.normal(k_noise, (1, n), dtype=jnp.float32)    # randn_like(x)

    out = pl.pallas_call(
        functools.partial(_dropout_randn_sum_kernel, p=p),
        out_shape=jax.ShapeDtypeStruct((1,), jnp.float32),
        in_specs=[
            pl.BlockSpec(memory_space=pltpu.MemorySpace.VMEM),   # x
            pl.BlockSpec(memory_space=pltpu.MemorySpace.VMEM),   # dropout uniforms
            pl.BlockSpec(memory_space=pltpu.MemorySpace.VMEM),   # normal noise
        ],
        out_specs=pl.BlockSpec(memory_space=pltpu.MemorySpace.SMEM),
    )(x_flat, u_drop, noise)
    return out[0]


if __name__ == "__main__":
    key = jax.random.PRNGKey(0)
    # Matches the module's implied input: x1 = torch.randn(1, 2, 2)
    x1 = jax.random.normal(key, (1, 2, 2), dtype=jnp.float32)

    result = dropout_randn_sum(x1, seed=1234, p=0.3)
    jax.block_until_ready(result)
    assert result.shape == () and result.dtype == jnp.float32
    assert bool(jnp.isfinite(result))
    print("KERNEL_OK")
</pallas_src>

<mosaic_0001>
module attributes {stable_mosaic.version = 11 : i64} {
  func.func @_dropout_randn_sum_kernel(%arg0: memref<1x4xf32, #tpu.memory_space<vmem>>, %arg1: memref<1x4xf32, #tpu.memory_space<vmem>>, %arg2: memref<1x4xf32, #tpu.memory_space<vmem>>, %arg3: memref<1xf32, #tpu.memory_space<smem>>) attributes {dimension_semantics = [], scalar_prefetch = 0 : i64, scratch_operands = 0 : i64, tpu.core_type = #tpu.core_type<tc>} {
    %c0 = arith.constant 0 : index
    %c0_0 = arith.constant 0 : index
    %0 = vector.load %arg0[%c0, %c0_0] : memref<1x4xf32, #tpu.memory_space<vmem>>, vector<1x4xf32>
    %c0_1 = arith.constant 0 : index
    %c0_2 = arith.constant 0 : index
    %1 = vector.load %arg1[%c0_1, %c0_2] : memref<1x4xf32, #tpu.memory_space<vmem>>, vector<1x4xf32>
    %cst = arith.constant 3.000000e-01 : f32
    %2 = vector.broadcast %cst : f32 to vector<1x4xf32>
    %3 = arith.cmpf oge, %1, %2 : vector<1x4xf32>
    %cst_3 = arith.constant 1.42857146 : f32
    %4 = vector.broadcast %cst_3 : f32 to vector<1x4xf32>
    %5 = arith.mulf %0, %4 : vector<1x4xf32>
    %cst_4 = arith.constant 0.000000e+00 : f32
    %6 = vector.broadcast %cst_4 : f32 to vector<1x4xf32>
    %7 = arith.select %3, %5, %6 : vector<1x4xi1>, vector<1x4xf32>
    %c0_5 = arith.constant 0 : index
    %c0_6 = arith.constant 0 : index
    %8 = vector.load %arg2[%c0_5, %c0_6] : memref<1x4xf32, #tpu.memory_space<vmem>>, vector<1x4xf32>
    %9 = arith.mulf %7, %8 : vector<1x4xf32>
    %10 = vector.shape_cast %9 : vector<1x4xf32> to vector<1x1x4xf32>
    %cst_7 = arith.constant dense<0.000000e+00> : vector<1xf32>
    %11 = vector.multi_reduction <add>, %10, %cst_7 [1, 2] : vector<1x1x4xf32> to vector<1xf32>
    %12 = vector.shape_cast %11 : vector<1xf32> to vector<1x1x1xf32>
    %13 = vector.extract %12[0, 0, 0] : f32 from vector<1x1x1xf32>
    %c0_8 = arith.constant 0 : index
    %14 = memref.load %arg3[%c0_8] : memref<1xf32, #tpu.memory_space<smem>>
    memref.store %13, %arg3[%c0_8] : memref<1xf32, #tpu.memory_space<smem>>
    return
  }
}

</mosaic_0001>

<bundles_post_ra>
// kernel: tpu_custom_call.1
= control target key start
LH: loop header
LB: loop body
LE: loop exit
PB: predicated region body
PF: predicated region fallthrough
CT: control target
= control target key end

     0   :  { %8 = vsyncpa [#allocation3], 0  ;;  %s186_s0 = inlined_call_operand.hbm [shape: f32[1,4], index: 0, kind: input, shape index: {}]   ;;  %s187_s1 = inlined_call_operand.hbm [shape: f32[1,4], index: 1, kind: input, shape index: {}]   ;;  %s188_s2 = inlined_call_operand.vmem [shape: f32[1,4], index: 2, kind: input, shape index: {}]   ;;  %s189_s3 = inlined_call_operand.hbm [shape: f32[1], index: 3, kind: output, shape index: {}]  }
   0x1   :  { %9 = vsyncpa [#allocation6], 0 }
   0x2   :  { %10 = vsyncpa [#allocation4], 0  ;;  %s16_s14 = sshll.u32 %s186_s0, 4  ;;  %s151_s15 = smov [#allocation2]   ;;  %s17_s14 = int_to_ptr.hbm [resolvable:$true] %s16_s14 }
   0x3   :  { %s18_s16 = sshll.u32 %s151_s15, 4  ;;  %s27_s19 = sshll.u32 %s187_s1, 4  ;;  %s19_s16 = int_to_ptr.vmem [resolvable:$true] %s18_s16  ;;  %s28_s19 = int_to_ptr.hbm [resolvable:$true] %s27_s19 }
   0x4   :  { %21 = dma.hbm_to_vmem [thread:$0]  %s17_s14, 16, %s19_s16, [#allocation3]  }
   0x5   :  { %s152_s20 = smov [#allocation5]  }
   0x6   :  { %s29_s21 = sshll.u32 %s152_s20, 4  ;;  %s30_s21 = int_to_ptr.vmem [resolvable:$true] %s29_s21 }
   0x7   :  { %32 = dma.hbm_to_vmem [thread:$0]  %s28_s19, 16, %s30_s21, [#allocation6]  }
   0x8   :  { %145 = dma.done.wait [#allocation3], 16  }
   0x9   :  { %146 = vsyncadd [#allocation3], 4294967280 }
   0xa   :  { %147 = dma.done.wait [#allocation6], 16  }
   0xb   :  { %148 = vsyncadd [#allocation6], 4294967280  ;;  %v43_v0 = vld [vmem:[#allocation2] sm:$0x1]  ;;  %v44_v1 = vld [vmem:[#allocation5] sm:$0x1] }
   0xc   :  { %vm45_vm0 = vcmp.ge.f32.partialorder %v44_v1, 0.3  ;;  %v46_v2 = vmul.f32 1.4285715, %v43_v0  ;;  %v48_v3 = vld [vmem:[%s188_s2] sm:$0x1] }
   0xd   :  { %vm50_vm1 = vcmask 24576   ;;  %s68_s24 = sshll.u32 %s189_s3, 4  ;;  %s153_s2 = smov [#allocation7]   ;;  %s69_s24 = int_to_ptr.hbm [resolvable:$true] %s68_s24 }
   0xe   :  { %v47_v4 = vsel %vm45_vm0, %v46_v2, 0.0 }
   0xf   :  { %v49_v5 = vmul.f32 %v48_v3, %v47_v4 }
  0x11   :  { %v51_v6 = vsel %vm50_vm1, %v49_v5, 0.0 }
  0x12   :  { %52 = vadd.xlane.f32.xlu0 %v51_v6 }
  0x85   :  { %v53_v7 = vpop.xlane.xlu0 %52 }
  0x86   :  { %v54_v8 = vrot.slane %v53_v7, 4 }
  0x88   :  { %v55_v9 = vadd.f32 %v54_v8, %v53_v7 }
  0x8a   :  { %v56_v10 = vrot.slane %v55_v9, 2 }
  0x8c   :  { %v57_v11 = vadd.f32 %v56_v10, %v55_v9 }
  0x8e   :  { %v58_v12 = vrot.slane %v57_v11, 1 }
  0x90   :  { %v59_v13 = vadd.f32 %v58_v12, %v57_v11 }
  0x92   :  { %80 = vpush %v59_v13 }
  0xc3   :  { %s81_s25 = spop %80 }
  0xc4   :  { %62 = sst [smem:[#allocation7]] %s81_s25 }
  0xc5   :  { %71 = dma.smem_to_hbm %s153_s2, 16, %s69_s24, [#allocation4]  }
  0xc6   :  { %149 = dma.done.wait [#allocation4], 16  }
  0xc7   :  { %150 = vsyncadd [#allocation4], 4294967280 }
  0xc8   :  { %76 = sfence }
  0xc9   :  { %77 = vsyncpa [#allocation3], 1 }
  0xca   :  { %78 = vsyncpa [#allocation6], 1 }
  0xcb   :  { %79 = vsyncpa [#allocation4], 1 }

</bundles_post_ra>
